<compile_context>
chip_gen: v6e
topology: v6e:2x2x1
jax: 0.10.0
libtpu: 0.0.40
codegen_flags: <defaults>
</compile_context>

<pallas_src>
import jax
import jax.numpy as jnp
import numpy as np
from jax.experimental import pallas as pl
from jax.experimental.pallas import tpu as pltpu


_MAX_BATCH_TILE = 4096  # rows per grid step (padded batch is always 128-aligned)


def _pick_batch_tile(batch_padded):
    """batch_padded is a multiple of 128.  Pick the largest 128-multiple tile
    that divides batch_padded, is <= _MAX_BATCH_TILE, and leaves >= 2 tiles
    when possible (so the 'parallel' grid axis can shard across v7x's 2 TCs)."""
    assert batch_padded % 128 == 0
    if batch_padded == 128:
        return 128, 1
    cap = min(_MAX_BATCH_TILE, (batch_padded // 2) // 128 * 128)
    cap = max(cap, 128)
    tile = cap
    while batch_padded % tile != 0:
        tile -= 128
    return tile, batch_padded // tile


def mfan_tile_kernel(y_ref, logits_ref, d0_ref, d1_ref, partial_ref, preds_ref):
    """One batch tile of CE / MSE / argmax-accuracy.

    Layouts:
      logits_ref : (C, BT)   classes on sublanes, batch on lanes
      y_ref      : (1, BT)   int32 labels, batch on lanes (-1 marks padding)
      d0/d1_ref  : (BT*D/128, 128) lane-dense slab (or (BT, D) fallback);
                   the kernel only ever full-block reduces it.
      partial_ref: (1, 1, 128) packed partial sums
                   lane 0 = sum of per-example CE, lane 1 = sum of squared
                   errors, lane 2 = #correct   (one unmasked lane-dense store)
      preds_ref  : (1, BT)   int32 predictions, batch on lanes
    """
    logits = logits_ref[...].astype(jnp.float32)                 # (C, BT) f32
    y = y_ref[...]                                               # (1, BT) int32
    C, BT = logits.shape

    valid = y >= 0                                               # padding mask
    cls_idx = jax.lax.broadcasted_iota(jnp.int32, (C, BT), 0)    # class id / sublane
    # NOTE: labels outside [0, C) (other than the -1 padding sentinel) silently
    # yield picked == 0 (PyTorch would raise); guard upstream if that matters.
    # TODO(synk): no in-kernel label-range assertion (would need debug_check).

    # ---- CrossEntropyLoss partial sum (stable logsumexp over C sublanes) ----
    m = jnp.max(logits, axis=0, keepdims=True)                   # (1, BT)
    lse = m + jnp.log(jnp.sum(jnp.exp(logits - m), axis=0, keepdims=True))
    picked = jnp.sum(jnp.where(cls_idx == y, logits, 0.0),
                     axis=0, keepdims=True)                      # (1, BT)
    ce = jnp.where(valid, lse - picked, 0.0)
    ce_sum = jnp.sum(ce, axis=1, keepdims=True)                  # (1, 1)

    # ---- argmax over classes, first-max semantics (torch.max(logits,1)[1]) --
    pred = jnp.min(jnp.where(logits == m, cls_idx, C), axis=0, keepdims=True)
    cor_sum = jnp.sum((pred == y).astype(jnp.float32),           # pad lanes never
                      axis=1, keepdims=True)                     # match (y == -1)
    # f32 count: exact while per-call #correct < 2^24.

    # ---- MSELoss(dist[0], dist[1]) partial sum (sum of squared errors) ------
    diff = d0_ref[...].astype(jnp.float32) - d1_ref[...].astype(jnp.float32)
    sq_sum = jnp.sum(diff * diff, keepdims=True)                 # (1, 1)

    preds_ref[...] = pred.astype(jnp.int32)                      # lane-dense store

    lane = jax.lax.broadcasted_iota(jnp.int32, (1, 128), 1)
    partial_ref[0] = (jnp.where(lane == 0, ce_sum, 0.0)
                      + jnp.where(lane == 1, sq_sum, 0.0)
                      + jnp.where(lane == 2, cor_sum, 0.0))      # (1, 128)


def mfan_step(logits, y, dist0, dist1):
    """Returns (loss_cls, loss_mse, loss_defense, corrects, preds, accuracy)."""
    B, C = logits.shape
    D = dist0.shape[1]

    # ---- pad batch to a multiple of 128 (lane-aligned tiles for any B) ------
    B_pad = ((B + 127) // 128) * 128
    pad = B_pad - B
    y = y.astype(jnp.int32)
    if pad:
        logits = jnp.pad(logits, ((0, pad), (0, 0)))
        y = jnp.pad(y, (0, pad), constant_values=-1)      # -1 => masked in kernel
        dist0 = jnp.pad(dist0, ((0, pad), (0, 0)))        # zeros => 0 sq error
        dist1 = jnp.pad(dist1, ((0, pad), (0, 0)))

    bt, num_tiles = _pick_batch_tile(B_pad)

    logits_t = jnp.transpose(logits)               # (C, B_pad): batch on lanes
    y_row = y.reshape(1, B_pad)                    # (1, B_pad): batch on lanes

    # ---- lane-dense layout for the MSE inputs (the biggest arrays) ----------
    use_dense = (B_pad * D) % 128 == 0 and ((bt * D) % (8 * 128) == 0
                                            or num_tiles == 1)
    if use_dense:
        rows_total = (B_pad * D) // 128
        rows_tile = (bt * D) // 128
        d0 = dist0.reshape(rows_total, 128)
        d1 = dist1.reshape(rows_total, 128)
        dist_spec = pl.BlockSpec((rows_tile, 128), lambda i: (i, 0))
    else:
        d0, d1 = dist0, dist1
        dist_spec = pl.BlockSpec((bt, D), lambda i: (i, 0))

    cost = pl.CostEstimate(
        flops=B_pad * (6 * C + 3 * D),
        transcendentals=B_pad * (C + 1),
        bytes_accessed=(logits_t.size + y_row.size + d0.size + d1.size
                        + num_tiles * 128 + B_pad) * 4)

    partials, preds_row = pl.pallas_call(
        mfan_tile_kernel,
        grid=(num_tiles,),
        in_specs=[
            pl.BlockSpec((1, bt), lambda i: (0, i)),    # labels
            pl.BlockSpec((C, bt), lambda i: (0, i)),    # logits^T
            dist_spec,                                  # dist[0]
            dist_spec,                                  # dist[1]
        ],
        out_specs=[
            pl.BlockSpec((1, 1, 128), lambda i: (i, 0, 0)),   # packed partial sums
            pl.BlockSpec((1, bt), lambda i: (0, i)),          # predictions
        ],
        out_shape=[
            jax.ShapeDtypeStruct((num_tiles, 1, 128), jnp.float32),
            jax.ShapeDtypeStruct((1, B_pad), jnp.int32),
        ],
        compiler_params=pltpu.CompilerParams(
            # Disjoint output blocks per tile -> truly parallel axis
            # (lets v7x shard tiles across its 2 TensorCores).
            dimension_semantics=("parallel",),
            # Per-tile footprint (double-buffered) is ~bt*(2D + C + 2)*8 B
            # ~= 2.2 MiB at bt=4096, D=32 -> far below every scoped limit.
            vmem_limit_bytes=32 * 1024 * 1024),
        cost_estimate=cost,
    )(y_row, logits_t, d0, d1)

    # Tiny cross-tile reduce + final scaling in XLA (glue, like accuracy in mfan()).
    sums = jnp.sum(partials[:, 0, :], axis=0)           # (128,)
    loss_cls = sums[0] * (1.0 / B)
    loss_mse = sums[1] * (1.0 / (B * D))
    loss_def = loss_cls + loss_mse
    corrects = jnp.round(sums[2]).astype(jnp.int32)
    accuracy = 100.0 * sums[2] / B
    preds = preds_row[0, :B]
    return loss_cls, loss_mse, loss_def, corrects, preds, accuracy


def _reference(logits, y, dist0, dist1):
    B = logits.shape[0]
    lse = jax.scipy.special.logsumexp(logits, axis=1)
    loss_cls = jnp.mean(lse - logits[jnp.arange(B), y])
    loss_mse = jnp.mean((dist0 - dist1) ** 2)
    pred = jnp.argmax(logits, axis=1)
    corrects = jnp.sum(pred == y)
    return loss_cls, loss_mse, loss_cls + loss_mse, corrects, pred


if __name__ == "__main__":
    cases = [
        (1024, 2, 32),   # lane-aligned: 512-row tiles, grid=(2,), parallel axis
        (130, 2, 32),    # unaligned: padded to 256, 2 tiles of 128
        (50, 2, 32),     # predict()'s batch of 50: padded to 128, single tile
    ]
    for (B, C, D) in cases:
        key = jax.random.PRNGKey(0)
        k1, k2, k3, k4 = jax.random.split(key, 4)
        logits = jax.random.normal(k1, (B, C), dtype=jnp.float32)
        y = jax.random.randint(k2, (B,), 0, C, dtype=jnp.int32)
        dist0 = jax.random.normal(k3, (B, D), dtype=jnp.float32)
        dist1 = jax.random.normal(k4, (B, D), dtype=jnp.float32)

        loss_cls, loss_mse, loss_def, corrects, preds, acc = jax.block_until_ready(
            mfan_step(logits, y, dist0, dist1))

        r_cls, r_mse, r_def, r_cor, r_pred = _reference(logits, y, dist0, dist1)
        np.testing.assert_allclose(np.asarray(loss_cls), np.asarray(r_cls),
                                   rtol=1e-4, atol=1e-5)
        np.testing.assert_allclose(np.asarray(loss_mse), np.asarray(r_mse),
                                   rtol=1e-4, atol=1e-5)
        np.testing.assert_allclose(np.asarray(loss_def), np.asarray(r_def),
                                   rtol=1e-4, atol=1e-5)
        np.testing.assert_array_equal(np.asarray(preds), np.asarray(r_pred))
        np.testing.assert_array_equal(np.asarray(corrects), np.asarray(r_cor))

    print("KERNEL_OK")
</pallas_src>

<mosaic_0001>
module attributes {stable_mosaic.version = 11 : i64} {
  func.func @mfan_tile_kernel(%arg0: i32, %arg1: memref<1x512xi32, #tpu.memory_space<vmem>>, %arg2: memref<2x512xf32, #tpu.memory_space<vmem>>, %arg3: memref<128x128xf32, #tpu.memory_space<vmem>>, %arg4: memref<128x128xf32, #tpu.memory_space<vmem>>, %arg5: memref<1x1x128xf32, #tpu.memory_space<vmem>>, %arg6: memref<1x512xi32, #tpu.memory_space<vmem>>) attributes {dimension_semantics = [#tpu.dimension_semantics<parallel>], iteration_bounds = array<i64: 2>, scalar_prefetch = 0 : i64, scratch_operands = 0 : i64, tpu.core_type = #tpu.core_type<tc>, window_params = [{transform_indices = @transform_0, window_bounds = array<i64: 1, 512>}, {transform_indices = @transform_1, window_bounds = array<i64: 2, 512>}, {transform_indices = @transform_2, window_bounds = array<i64: 128, 128>}, {transform_indices = @transform_3, window_bounds = array<i64: 128, 128>}, {transform_indices = @transform_4, window_bounds = array<i64: 1, 1, 128>}, {transform_indices = @transform_5, window_bounds = array<i64: 1, 512>}]} {
    %c0 = arith.constant 0 : index
    %c0_0 = arith.constant 0 : index
    %0 = vector.load %arg2[%c0, %c0_0] : memref<2x512xf32, #tpu.memory_space<vmem>>, vector<2x512xf32>
    %c0_1 = arith.constant 0 : index
    %c0_2 = arith.constant 0 : index
    %1 = vector.load %arg1[%c0_1, %c0_2] : memref<1x512xi32, #tpu.memory_space<vmem>>, vector<1x512xi32>
    %c0_i32 = arith.constant 0 : i32
    %2 = vector.broadcast %c0_i32 : i32 to vector<1x512xi32>
    %3 = arith.cmpi sge, %1, %2 : vector<1x512xi32>
    %4 = tpu.iota {dimensions = array<i32: 0>} : vector<2x512xi32>
    %cst = arith.constant dense<0xFF800000> : vector<512xf32>
    %5 = vector.multi_reduction <maximumf>, %0, %cst [0] : vector<2x512xf32> to vector<512xf32>
    %6 = vector.shape_cast %5 : vector<512xf32> to vector<1x512xf32>
    %7 = vector.broadcast %6 : vector<1x512xf32> to vector<2x512xf32>
    %8 = arith.subf %0, %7 : vector<2x512xf32>
    %9 = math.exp %8 : vector<2x512xf32>
    %cst_3 = arith.constant dense<0.000000e+00> : vector<512xf32>
    %10 = vector.multi_reduction <add>, %9, %cst_3 [0] : vector<2x512xf32> to vector<512xf32>
    %11 = vector.shape_cast %10 : vector<512xf32> to vector<1x512xf32>
    %12 = math.log %11 : vector<1x512xf32>
    %13 = arith.addf %6, %12 : vector<1x512xf32>
    %14 = vector.broadcast %1 : vector<1x512xi32> to vector<2x512xi32>
    %15 = arith.cmpi eq, %4, %14 : vector<2x512xi32>
    %cst_4 = arith.constant 0.000000e+00 : f32
    %16 = vector.broadcast %cst_4 : f32 to vector<2x512xf32>
    %17 = arith.select %15, %0, %16 : vector<2x512xi1>, vector<2x512xf32>
    %cst_5 = arith.constant dense<0.000000e+00> : vector<512xf32>
    %18 = vector.multi_reduction <add>, %17, %cst_5 [0] : vector<2x512xf32> to vector<512xf32>
    %19 = vector.shape_cast %18 : vector<512xf32> to vector<1x512xf32>
    %20 = arith.subf %13, %19 : vector<1x512xf32>
    %cst_6 = arith.constant 0.000000e+00 : f32
    %21 = vector.broadcast %cst_6 : f32 to vector<1x512xf32>
    %22 = arith.select %3, %20, %21 : vector<1x512xi1>, vector<1x512xf32>
    %cst_7 = arith.constant dense<0.000000e+00> : vector<1xf32>
    %23 = vector.multi_reduction <add>, %22, %cst_7 [1] : vector<1x512xf32> to vector<1xf32>
    %24 = vector.shape_cast %23 : vector<1xf32> to vector<1x1xf32>
    %25 = vector.broadcast %6 : vector<1x512xf32> to vector<2x512xf32>
    %26 = arith.cmpf oeq, %0, %25 : vector<2x512xf32>
    %c2_i32 = arith.constant 2 : i32
    %27 = vector.broadcast %c2_i32 : i32 to vector<2x512xi32>
    %28 = arith.select %26, %4, %27 : vector<2x512xi1>, vector<2x512xi32>
    %cst_8 = arith.constant dense<2147483647> : vector<512xi32>
    %29 = vector.multi_reduction <minsi>, %28, %cst_8 [0] : vector<2x512xi32> to vector<512xi32>
    %30 = vector.shape_cast %29 : vector<512xi32> to vector<1x512xi32>
    %31 = arith.cmpi eq, %30, %1 : vector<1x512xi32>
    %32 = arith.extui %31 : vector<1x512xi1> to vector<1x512xi32>
    %33 = arith.sitofp %32 : vector<1x512xi32> to vector<1x512xf32>
    %cst_9 = arith.constant dense<0.000000e+00> : vector<1xf32>
    %34 = vector.multi_reduction <add>, %33, %cst_9 [1] : vector<1x512xf32> to vector<1xf32>
    %35 = vector.shape_cast %34 : vector<1xf32> to vector<1x1xf32>
    %c0_10 = arith.constant 0 : index
    %c0_11 = arith.constant 0 : index
    %36 = vector.load %arg3[%c0_10, %c0_11] : memref<128x128xf32, #tpu.memory_space<vmem>>, vector<128x128xf32>
    %c0_12 = arith.constant 0 : index
    %c0_13 = arith.constant 0 : index
    %37 = vector.load %arg4[%c0_12, %c0_13] : memref<128x128xf32, #tpu.memory_space<vmem>>, vector<128x128xf32>
    %38 = arith.subf %36, %37 : vector<128x128xf32>
    %39 = arith.mulf %38, %38 : vector<128x128xf32>
    %40 = vector.shape_cast %39 : vector<128x128xf32> to vector<1x128x128xf32>
    %cst_14 = arith.constant dense<0.000000e+00> : vector<1xf32>
    %41 = vector.multi_reduction <add>, %40, %cst_14 [1, 2] : vector<1x128x128xf32> to vector<1xf32>
    %42 = vector.shape_cast %41 : vector<1xf32> to vector<1x1x1xf32>
    %43 = vector.extract %42[0, 0, 0] : f32 from vector<1x1x1xf32>
    %44 = vector.broadcast %43 : f32 to vector<1x1xf32>
    %c0_15 = arith.constant 0 : index
    %c0_16 = arith.constant 0 : index
    %45 = vector.load %arg6[%c0_15, %c0_16] : memref<1x512xi32, #tpu.memory_space<vmem>>, vector<1x512xi32>
    tpu.vector_store %arg6[%c0_15, %c0_16], %30 {strides = array<i32>} : memref<1x512xi32, #tpu.memory_space<vmem>>, vector<1x512xi32>,
    %46 = tpu.iota {dimensions = array<i32: 1>} : vector<1x128xi32>
    %c0_i32_17 = arith.constant 0 : i32
    %47 = vector.broadcast %c0_i32_17 : i32 to vector<1x128xi32>
    %48 = arith.cmpi eq, %46, %47 : vector<1x128xi32>
    %cst_18 = arith.constant 0.000000e+00 : f32
    %49 = vector.shape_cast %24 : vector<1x1xf32> to vector<1x1xf32>
    %50 = vector.broadcast %49 : vector<1x1xf32> to vector<1x128xf32>
    %51 = vector.broadcast %cst_18 : f32 to vector<1x128xf32>
    %52 = arith.select %48, %50, %51 : vector<1x128xi1>, vector<1x128xf32>
    %c1_i32 = arith.constant 1 : i32
    %53 = vector.broadcast %c1_i32 : i32 to vector<1x128xi32>
    %54 = arith.cmpi eq, %46, %53 : vector<1x128xi32>
    %cst_19 = arith.constant 0.000000e+00 : f32
    %55 = vector.shape_cast %44 : vector<1x1xf32> to vector<1x1xf32>
    %56 = vector.broadcast %55 : vector<1x1xf32> to vector<1x128xf32>
    %57 = vector.broadcast %cst_19 : f32 to vector<1x128xf32>
    %58 = arith.select %54, %56, %57 : vector<1x128xi1>, vector<1x128xf32>
    %59 = arith.addf %52, %58 : vector<1x128xf32>
    %c2_i32_20 = arith.constant 2 : i32
    %60 = vector.broadcast %c2_i32_20 : i32 to vector<1x128xi32>
    %61 = arith.cmpi eq, %46, %60 : vector<1x128xi32>
    %cst_21 = arith.constant 0.000000e+00 : f32
    %62 = vector.shape_cast %35 : vector<1x1xf32> to vector<1x1xf32>
    %63 = vector.broadcast %62 : vector<1x1xf32> to vector<1x128xf32>
    %64 = vector.broadcast %cst_21 : f32 to vector<1x128xf32>
    %65 = arith.select %61, %63, %64 : vector<1x128xi1>, vector<1x128xf32>
    %66 = arith.addf %59, %65 : vector<1x128xf32>
    %c0_22 = arith.constant 0 : index
    %c0_23 = arith.constant 0 : index
    %c0_24 = arith.constant 0 : index
    %67 = vector.load %arg5[%c0_22, %c0_23, %c0_24] : memref<1x1x128xf32, #tpu.memory_space<vmem>>, vector<1x1x128xf32>
    %68 = vector.shape_cast %67 : vector<1x1x128xf32> to vector<1x128xf32>
    %69 = vector.shape_cast %66 : vector<1x128xf32> to vector<1x1x128xf32>
    tpu.vector_store %arg5[%c0_22, %c0_23, %c0_24], %69 {strides = array<i32>} : memref<1x1x128xf32, #tpu.memory_space<vmem>>, vector<1x1x128xf32>,
    return
  }
  func.func @transform_0(%arg0: i32) -> (i32, i32) {
    %c0_i32 = arith.constant 0 : i32
    %c0_i32_0 = arith.constant 0 : i32
    return %c0_i32, %arg0 : i32, i32
  }
  func.func @transform_1(%arg0: i32) -> (i32, i32) {
    %c0_i32 = arith.constant 0 : i32
    %c0_i32_0 = arith.constant 0 : i32
    return %c0_i32, %arg0 : i32, i32
  }
  func.func @transform_2(%arg0: i32) -> (i32, i32) {
    %c0_i32 = arith.constant 0 : i32
    %c0_i32_0 = arith.constant 0 : i32
    return %arg0, %c0_i32 : i32, i32
  }
  func.func @transform_3(%arg0: i32) -> (i32, i32) {
    %c0_i32 = arith.constant 0 : i32
    %c0_i32_0 = arith.constant 0 : i32
    return %arg0, %c0_i32 : i32, i32
  }
  func.func @transform_4(%arg0: i32) -> (i32, i32, i32) {
    %c0_i32 = arith.constant 0 : i32
    %c0_i32_0 = arith.constant 0 : i32
    %c0_i32_1 = arith.constant 0 : i32
    return %arg0, %c0_i32, %c0_i32_0 : i32, i32, i32
  }
  func.func @transform_5(%arg0: i32) -> (i32, i32) {
    %c0_i32 = arith.constant 0 : i32
    %c0_i32_0 = arith.constant 0 : i32
    return %c0_i32, %arg0 : i32, i32
  }
}

</mosaic_0001>

<bundles_post_ra>
// kernel: tpu_custom_call.1
= control target key start
LH: loop header
LB: loop body
LE: loop exit
PB: predicated region body
PF: predicated region fallthrough
CT: control target
= control target key end

     0   :  { %s1907_s0 = inlined_call_operand.hbm [shape: s32[1,1024], index: 0, kind: input, shape index: {}]   ;;  %s1908_s1 = inlined_call_operand.hbm [shape: f32[2,1024], index: 1, kind: input, shape index: {}]   ;;  %s1909_s2 = inlined_call_operand.hbm [shape: f32[256,128], index: 2, kind: input, shape index: {}]   ;;  %s1910_s3 = inlined_call_operand.hbm [shape: f32[256,128], index: 3, kind: input, shape index: {}]   ;;  %s1911_s4 = inlined_call_operand.hbm [shape: f32[2,1,128], index: 4, kind: output, shape index: {0}]   ;;  %s1912_s5 = inlined_call_operand.hbm [shape: s32[1,1024], index: 5, kind: output, shape index: {1}]  }
   0x1   :  { %1916 = sst [smem:[#allocation20_spill]] %s1908_s1 }
   0x2   :  { %11 = vsyncpa [#allocation3], 0 }
   0x3   :  { %13 = vsyncpa [#allocation3 + $0x1], 0 }
   0x4   :  { %14 = vsyncpa [#allocation6], 0 }
   0x5   :  { %16 = vsyncpa [#allocation6 + $0x1], 0 }
   0x6   :  { %17 = vsyncpa [#allocation9], 0 }
   0x7   :  { %19 = vsyncpa [#allocation9 + $0x1], 0 }
   0x8   :  { %20 = vsyncpa [#allocation4], 0 }
   0x9   :  { %22 = vsyncpa [#allocation4 + $0x1], 0 }
   0xa   :  { %23 = vsyncpa [#allocation12], 0 }
   0xb   :  { %25 = vsyncpa [#allocation12 + $0x1], 0  ;;  %s1422_s18 = smov 0   ;;  %s1424_s19 = smov 0  }
   0xc   :  { %s1426_s20 = smov 0   ;;  %s1428_s21 = smov 0  }
   0xd LB: > { %1917 = sst [smem:[#allocation18_spill]] %s1374_s20  ;;  %s1443_s22 = sadd.s32 4294967295, %s1378_s21   ;;  %s1378_s21 = sphi %s1428_s21, %s1938_s21   ;;  %s1374_s20 = sphi %s1426_s20, %s1935_s20   ;;  %s1370_s19 = sphi %s1424_s19, %s1937_s19   ;;  %s1366_s18 = sphi %s1422_s18, %s1936_s18  }
   0xe   : > { %s1043_s23 = sadd.s32 4294967294, %s1378_s21   ;;  %s1447_s24 = sadd.s32 1, %s1378_s21  }
   0xf   : > { %s38_s25 = sadd.s32 1, %s1374_s20  ;;  %s35_s26 = ssub.s32 %s1378_s21, %s1447_s24 }
  0x10   : > { %p45_p0 = scmp.ne.s32.totalorder %s1374_s20, %s1370_s19  ;;  %p36_p1 = scmp.eq.s32.totalorder %s35_s26, 0 }
  0x11   : > { %p46_p2 = scmp.eq.s32.totalorder %s1378_s21, 0  ;;  %p51_p3 = scmp.ne.s32.totalorder %s1370_s19, %s1366_s18 }
  0x12   : > { %p52_p4 = scmp.eq.s32.totalorder %s1443_s22, 0  ;;  %p153_p7 = scmp.eq.s32.totalorder %s1443_s22, 1 }
  0x13   : > { %s1459_s27 = scalar_select %p36_p1, %s1374_s20, %s38_s25  }
  0x14   : > { %p47_p5 = por %p46_p2, %p45_p0  ;;  %p1461_p6 = por %p52_p4, %p51_p3 }
  0x15   : > { %1918 = sst [smem:[#allocation19_spill]] %s1459_s27  ;;  %p159_p8 = scmp.eq.s32.totalorder %s1043_s23, 1 }
  0x16   : > { %s1919_s28 = scalar_select %p1461_p6, 1, 0 }
  0x17   : > { %p1113_p10 = scmp.lt.s32.totalorder %s1378_s21, 2  ;;  %p1468_p11 = por %p153_p7, %p45_p0 }
  0x18   : > { %p1472_p12 = por %p159_p8, %p51_p3  ;;  %s1477_s6 = sand.u32 1, %s1374_s20  }
  0x19   : > { %s1920_s29 = scalar_select %p1468_p11, 1, 0 }
  0x1a   : > { %s1921_s30 = scalar_select %p1472_p12, 1, 0 }
  0x1b   : > { %p1479_p13 = pnand %p1113_p10, %p47_p5  ;;  %s224_s8 = sand.u32 1, %s1378_s21  }
  0x1c   : > { %s1049_s9 = sshll.u32 %s1477_s6, 3  ;;  %s1075_s10 = sshll.u32 %s1378_s21, 7 }
  0x1d   : > { %s1923_s1 = sld [smem:[#allocation20_spill]]  ;;  %s228_s14 = scalar_lea.vmem [#allocation5], %s1049_s9 }
  0x1e   : > { %s236_s15 = sshll.u32 %s228_s14, 4  ;;  %s1492_s16 = scalar_lea.sflag [#allocation6], %s224_s8  ;;  %s237_s15 = int_to_ptr.vmem [resolvable:$true] %s236_s15 }
  0x1f   : > { %p1498_p2 = pneg %p1479_p13 }
  0x23   : > { %s1489_s13 = scalar_lea.hbm %s1923_s1, %s1075_s10  ;;  %s1169_s9 = scalar_lea.hbm %s1923_s1, 256 }
  0x24   : > { %s1164_s17 = scalar_lea.hbm %s1489_s13, 128  ;;  %p1170_p5 = scmp.lt.s32.totalorder %s1489_s13, %s1923_s1 }
  0x25   : > { %p1165_p1 = scmp.ne.s32.totalorder %s1489_s13, %s1164_s17  ;;  %p1171_p7 = scmp.lt.s32.totalorder %s1169_s9, %s1164_s17 }
  0x27   : > { %p1167_p3 = pnand %p1498_p2, %p1165_p1  ;;  %p1172_p8 = por %p1171_p7, %p1170_p5 }
  0x29   : > { %p1168_p4 = pneg %p1167_p3 }
  0x2b   : > { %p1173_p10 = pnand %p1172_p8, %p1168_p4 }
  0x2d   : > { %1176 = shalt.err (!%p1173_p10)
}
  0x2e   : > { %s1177_s8 = scalar_lea.vmem %s237_s15, 128  ;;  %s1380_s12 = smov [#allocation5]  }
  0x2f   : > { %p1178_p9 = scmp.ne.s32.totalorder %s237_s15, %s1177_s8  ;;  %s1182_s14 = sshll.u32 %s1380_s12, 4  ;;  %s1183_s14 = int_to_ptr.vmem [resolvable:$false] %s1182_s14 }
  0x30   : > { %s1184_s27 = scalar_lea.vmem %s1183_s14, 256  ;;  %p1185_p1 = scmp.lt.s32.totalorder %s237_s15, %s1183_s14 }
  0x31   : > { %p1180_p0 = pnand %p1178_p9, %p1498_p2  ;;  %p1186_p3 = scmp.lt.s32.totalorder %s1184_s27, %s1177_s8 }
  0x33   : > { %p1181_p12 = pneg %p1180_p0  ;;  %p1187_p11 = por %p1186_p3, %p1185_p1 }
  0x35   : > { %p1188_p6 = pnand %p1187_p11, %p1181_p12 }
  0x37   : > { %1191 = shalt.err (!%p1188_p6)
}
  0x38   : > { %1099 = dma.hbm_to_vmem [thread:$0]  (!%p1479_p13), %s1489_s13, 128, %s237_s15, %s1492_s16  }
  0x39   : > { %p283_p9 = scmp.lt.s32.totalorder %s1378_s21, 3  ;;  %s1046_s17 = sshll.u32 %s1477_s6, 2 }
  0x3a   : > { %s1074_s25 = sshll.u32 %s1378_s21, 6  ;;  %p1925_p0 = scmp.ge.s32.totalorder %s1378_s21, 1 }
  0x3b   : > { %s1529_s10 = scalar_lea.hbm %s1907_s0, %s1074_s25  ;;  %s209_s11 = scalar_lea.vmem [#allocation2], %s1046_s17 }
  0x3c   : > { %p1522_p4 = pnand %p1925_p0, %p283_p9  ;;  %s217_s8 = sshll.u32 %s209_s11, 4  ;;  %s218_s8 = int_to_ptr.vmem [resolvable:$true] %s217_s8 }
  0x3d   : > { %s206_s15 = scalar_lea.sflag [#allocation3], %s1477_s6  ;;  %s1192_s12 = scalar_lea.hbm %s1529_s10, 64 }
  0x3e   : > { %s1926_s27 = scalar_select %p1522_p4, 1, 0 }
  0x3f   : > { %p1193_p6 = scmp.ne.s32.totalorder %s1529_s10, %s1192_s12  ;;  %s1197_s20 = scalar_lea.hbm %s1907_s0, 128 }
  0x40   : > { %p1198_p5 = scmp.lt.s32.totalorder %s1529_s10, %s1907_s0  ;;  %p1199_p7 = scmp.lt.s32.totalorder %s1197_s20, %s1192_s12 }
  0x41   : > { %p1195_p11 = pnand %p1193_p6, %p1498_p2 }
  0x42   : > { %p1200_p8 = por %p1199_p7, %p1198_p5 }
  0x43   : > { %p1196_p12 = pneg %p1195_p11 }
  0x45   : > { %p1201_p10 = pnand %p1200_p8, %p1196_p12 }
  0x47   : > { %1204 = shalt.err (!%p1201_p10)
}
  0x48   : > { %s1205_s17 = scalar_lea.vmem %s218_s8, 64  ;;  %s1381_s9 = smov [#allocation2]  }
  0x49   : > { %p1206_p1 = scmp.ne.s32.totalorder %s218_s8, %s1205_s17  ;;  %s1210_s11 = sshll.u32 %s1381_s9, 4  ;;  %s1211_s11 = int_to_ptr.vmem [resolvable:$false] %s1210_s11 }
  0x4a   : > { %s1212_s13 = scalar_lea.vmem %s1211_s11, 128  ;;  %p1213_p0 = scmp.lt.s32.totalorder %s218_s8, %s1211_s11 }
  0x4b   : > { %p1208_p3 = pnand %p1206_p1, %p1498_p2  ;;  %p1214_p6 = scmp.lt.s32.totalorder %s1212_s13, %s1205_s17 }
  0x4d   : > { %p1209_p9 = pneg %p1208_p3  ;;  %p1215_p11 = por %p1214_p6, %p1213_p0 }
  0x4f   : > { %p1216_p4 = pnand %p1215_p11, %p1209_p9 }
  0x51   : > { %1219 = shalt.err (!%p1216_p4)
}
  0x52   : > { %1096 = dma.hbm_to_vmem [thread:$0]  (!%p1479_p13), %s1529_s10, 64, %s218_s8, %s206_s15  }
  0x53   : > { %s1076_s1 = sshll.u32 %s1378_s21, 11  ;;  %s1927_s26 = sshll.u32 %s1477_s6, 7 }
  0x54   : > { %s1555_s14 = scalar_lea.hbm %s1909_s2, %s1076_s1  ;;  %s247_s13 = scalar_lea.vmem [#allocation7], %s1927_s26 }
  0x55   : > { %s254_s25 = sshll.u32 %s247_s13, 4  ;;  %s1220_s17 = scalar_lea.hbm %s1555_s14, 2048  ;;  %s1559_s25 = int_to_ptr.vmem [resolvable:$true] %s254_s25 }
  0x56   : > { %p1221_p4 = scmp.ne.s32.totalorder %s1555_s14, %s1220_s17  ;;  %s1225_s15 = scalar_lea.hbm %s1909_s2, 4096 }
  0x57   : > { %p1226_p7 = scmp.lt.s32.totalorder %s1555_s14, %s1909_s2  ;;  %p1227_p8 = scmp.lt.s32.totalorder %s1225_s15, %s1220_s17 }
  0x58   : > { %p1223_p12 = pnand %p1221_p4, %p1498_p2 }
  0x59   : > { %p1228_p10 = por %p1227_p8, %p1226_p7 }
  0x5a   : > { %p1224_p5 = pneg %p1223_p12 }
  0x5c   : > { %p1229_p1 = pnand %p1228_p10, %p1224_p5 }
  0x5e   : > { %1232 = shalt.err (!%p1229_p1)
}
  0x5f   : > { %s1233_s20 = scalar_lea.vmem %s1559_s25, 2048  ;;  %s1382_s12 = smov [#allocation7]  }
  0x60   : > { %p1234_p3 = scmp.ne.s32.totalorder %s1559_s25, %s1233_s20  ;;  %s1238_s26 = sshll.u32 %s1382_s12, 4  ;;  %s1239_s26 = int_to_ptr.vmem [resolvable:$false] %s1238_s26 }
  0x61   : > { %s1240_s13 = scalar_lea.vmem %s1239_s26, 4096  ;;  %p1241_p6 = scmp.lt.s32.totalorder %s1559_s25, %s1239_s26 }
  0x62   : > { %p1236_p9 = pnand %p1234_p3, %p1498_p2  ;;  %p1242_p11 = scmp.lt.s32.totalorder %s1240_s13, %s1233_s20 }
  0x64   : > { %p1237_p0 = pneg %p1236_p9  ;;  %p1243_p4 = por %p1242_p11, %p1241_p6 }
  0x66   : > { %p1244_p12 = pnand %p1243_p4, %p1237_p0 }
  0x68   : > { %1247 = shalt.err (!%p1244_p12)
}
  0x69   : > { %s1383_s17 = smov 128   ;;  %s1384_s10 = smov 8  }
  0x6a   : > { %1102 = dma.hbm_to_vmem [thread:$0]  (!%p1479_p13), %s1555_s14, 2048, %s1559_s25, %s1492_s16, %s1383_s17, %s1383_s17, %s1384_s10  }
  0x6b   : > { %s1590_s9 = scalar_lea.hbm %s1910_s3, %s1076_s1  ;;  %s1928_s11 = sshll.u32 %s1477_s6, 7 }
  0x6c   : > { %s268_s20 = scalar_lea.vmem [#allocation8], %s1928_s11  ;;  %s265_s26 = scalar_lea.sflag [#allocation9], %s1477_s6 }
  0x6d   : > { %s275_s12 = sshll.u32 %s268_s20, 4  ;;  %s1248_s13 = scalar_lea.hbm %s1590_s9, 2048  ;;  %s1594_s12 = int_to_ptr.vmem [resolvable:$true] %s275_s12 }
  0x6e   : > { %p1249_p5 = scmp.ne.s32.totalorder %s1590_s9, %s1248_s13  ;;  %s1253_s25 = scalar_lea.hbm %s1910_s3, 4096 }
  0x6f   : > { %p1254_p10 = scmp.lt.s32.totalorder %s1590_s9, %s1910_s3  ;;  %p1255_p1 = scmp.lt.s32.totalorder %s1253_s25, %s1248_s13 }
  0x70   : > { %p1251_p7 = pnand %p1249_p5, %p1498_p2 }
  0x71   : > { %p1256_p3 = por %p1255_p1, %p1254_p10 }
  0x72   : > { %p1252_p8 = pneg %p1251_p7 }
  0x74   : > { %p1257_p9 = pnand %p1256_p3, %p1252_p8 }
  0x76   : > { %1260 = shalt.err (!%p1257_p9)
}
  0x77   : > { %s1261_s6 = scalar_lea.vmem %s1594_s12, 2048  ;;  %s1385_s15 = smov [#allocation8]  }
  0x78   : > { %p1262_p0 = scmp.ne.s32.totalorder %s1594_s12, %s1261_s6  ;;  %s1266_s11 = sshll.u32 %s1385_s15, 4  ;;  %s1267_s11 = int_to_ptr.vmem [resolvable:$false] %s1266_s11 }
  0x79   : > { %s1268_s20 = scalar_lea.vmem %s1267_s11, 4096  ;;  %p1269_p4 = scmp.lt.s32.totalorder %s1594_s12, %s1267_s11 }
  0x7a   : > { %p1264_p6 = pnand %p1262_p0, %p1498_p2  ;;  %p1270_p12 = scmp.lt.s32.totalorder %s1268_s20, %s1261_s6 }
  0x7c   : > { %p1265_p11 = pneg %p1264_p6  ;;  %p1271_p5 = por %p1270_p12, %p1269_p4 }
  0x7e   : > { %p1272_p7 = pnand %p1271_p5, %p1265_p11 }
  0x80   : > { %1275 = shalt.err (!%p1272_p7)
}
  0x81   : > { %1105 = dma.hbm_to_vmem [thread:$0]  (!%p1479_p13), %s1590_s9, 2048, %s1594_s12, %s265_s26, %s1383_s17, %s1383_s17, %s1384_s10  }
  0x82   : > { %p1929_p2 = scmp.ne.s32.totalorder %s1926_s27, 0 }
  0x83   : > { %s1623_s23 = sand.u32 (!%p1929_p2), 1, %s1370_s19   ;;  %p1930_p8 = scmp.ne.s32.totalorder (!%p1929_p2), %s1919_s28, 0 }
  0x84   : > { %287 = sbr.rel (%p1929_p2) target bundleno = 408 (0x198), region = 36  ;;  %s1059_s13 = sshll.u32 (!%p1929_p2), %s1623_s23, 2 }
  0x85   : > { %s290_s16 = scalar_lea.sflag (!%p1929_p2), [#allocation3], %s1623_s23  ;;  %s1629_s7 = scalar_lea.vmem (!%p1929_p2), [#allocation2], %s1059_s13 }
  0x89   : > { %1345 = dma.done.wait (%p1930_p8), %s290_s16, 64  }
  0x8a   : > { %1347 = vsyncadd (%p1930_p8), %s290_s16, 4294967232  ;;  %s298_s27 = sand.u32 1, %s1443_s22   ;;  %s1060_s17 = sshll.u32 %s1623_s23, 3 }
  0x8b   : > { %s299_s10 = scalar_lea.sflag [#allocation6], %s298_s27  ;;  %s1637_s9 = scalar_lea.vmem [#allocation5], %s1060_s17 }
  0x8c   : > { %1349 = dma.done.wait (%p1930_p8), %s299_s10, 2176  }
  0x8d   : > { %1351 = vsyncadd (%p1930_p8), %s299_s10, 4294965120  ;;  %s1061_s12 = sshll.u32 %s1623_s23, 7  ;;  %s317_s14 = scalar_lea.sflag [#allocation9], %s1623_s23 }
  0x8e   : > { %s1644_s26 = scalar_lea.vmem [#allocation7], %s1061_s12  ;;  %s1647_s25 = scalar_lea.vmem [#allocation8], %s1061_s12 }
  0x8f   : > { %1353 = dma.done.wait (%p1930_p8), %s317_s14, 2048  }
  0x90   : > { %1355 = vsyncadd (%p1930_p8), %s317_s14, 4294965248  ;;  %v718_v0 = vld [vmem:[%s1644_s26] sm:$0xff]  ;;  %v719_v1 = vld [vmem:[%s1644_s26 + $0x8] sm:$0xff]  ;;  %v374_v2 = vlaneseq  ;;  %v1386_v3 = vmov 1983009808   ;;  %vm398_vm0 = vcmask 1041408  }
  0x91   : > { %v379_v4 = vunpack.c.l.s4 %v1386_v3  ;;  %v720_v5 = vld [vmem:[%s1644_s26 + $0x10] sm:$0xff]  ;;  %v734_v6 = vld [vmem:[%s1647_s25] sm:$0xff]  ;;  %v735_v7 = vld [vmem:[%s1647_s25 + $0x8] sm:$0xff]  ;;  %vm621_vm13 = vcmask 1040384   ;;  %s365_s28 = scalar_lea.vmem [#allocation11], %s1059_s13  ;;  %s1078_s1 = sshll.u32 %s1443_s22, 6 }
  0x92   : > { %v736_v8 = vld [vmem:[%s1647_s25 + $0x10] sm:$0xff]  ;;  %v750_v9 = vsub.f32 %v718_v0, %v734_v6  ;;  %v751_v10 = vsub.f32 %v719_v1, %v735_v7  ;;  %v721_v11 = vld [vmem:[%s1644_s26 + $0x18] sm:$0xff]  ;;  %v1662_v13 = vshrl.u32 %v374_v2, 7  ;;  %v722_v16 = vld [vmem:[%s1644_s26 + $0x20] sm:$0xff]  ;;  %s879_s8 = sshll.u32 %s365_s28, 4  ;;  %s877_s11 = scalar_lea.hbm %s1912_s5, %s1078_s1  ;;  %s880_s8 = int_to_ptr.vmem [resolvable:$true] %s879_s8 }
  0x93   : > { %v737_v12 = vld [vmem:[%s1647_s25 + $0x18] sm:$0xff]  ;;  %v380_v14 = vunpack.c.0.s8 %v379_v4  ;;  %v752_v15 = vsub.f32 %v720_v5, %v736_v8  ;;  %v738_v17 = vld [vmem:[%s1647_s25 + $0x20] sm:$0xff]  ;;  %v723_v21 = vld [vmem:[%s1644_s26 + $0x28] sm:$0xff]  ;;  %s852_s20 = scalar_lea.sflag [#allocation12], %s1623_s23  ;;  %s1276_s16 = scalar_lea.vmem %s880_s8, 64 }
  0x94   : > { %v753_v18 = vsub.f32 %v721_v11, %v737_v12  ;;  %v766_v19 = vmul.f32 %v750_v9, %v750_v9  ;;  %v767_v20 = vmul.f32 %v751_v10, %v751_v10  ;;  %v739_v22 = vld [vmem:[%s1647_s25 + $0x28] sm:$0xff]  ;;  %v724_v24 = vld [vmem:[%s1644_s26 + $0x30] sm:$0xff]  ;;  %v754_v26 = vsub.f32 %v722_v16, %v738_v17  ;;  %v725_v29 = vld [vmem:[%s1644_s26 + $0x38] sm:$0xff]  ;;  %p1277_p13 = scmp.ne.s32.totalorder %s880_s8, %s1276_s16  ;;  %p1931_p10 = scmp.ne.s32.totalorder %s1920_s29, 0 }
  0x95   : > { %v1669_v23 = vsub.s32 %v380_v14, %v1662_v13  ;;  %v740_v25 = vld [vmem:[%s1647_s25 + $0x30] sm:$0xff]  ;;  %v768_v27 = vmul.f32 %v752_v15, %v752_v15  ;;  %v741_v30 = vld [vmem:[%s1647_s25 + $0x38] sm:$0xff]  ;;  %v755_v31 = vsub.f32 %v723_v21, %v739_v22  ;;  %v726_v34 = vld [vmem:[%s1644_s26 + $0x40] sm:$0xff] }
  0x96   : > { %v1674_v28 = vld [vmem:[%s1637_s9] sm:$0xff]  ;;  %v769_v32 = vmul.f32 %v753_v18, %v753_v18  ;;  %v782_v33 = vadd.f32 %v767_v20, %v766_v19  ;;  %v742_v35 = vld [vmem:[%s1647_s25 + $0x40] sm:$0xff]  ;;  %v756_v36 = vsub.f32 %v724_v24, %v740_v25  ;;  %v770_v39 = vmul.f32 %v754_v26, %v754_v26  ;;  %v727_v45 = vld [vmem:[%s1644_s26 + $0x48] sm:$0xff]  ;;  %p1278_p1 = pnand %p1277_p13, %p1931_p10 }
  0x97   : > { %v377_v37 = vcombine.high %v1674_v28, %v1674_v28  ;;  %v1684_v38 = vrot.slane %v1674_v28, %v1669_v23  ;;  %v757_v41 = vsub.f32 %v725_v29, %v741_v30  ;;  %v743_v46 = vld [vmem:[%s1647_s25 + $0x48] sm:$0xff]  ;;  %v758_v47 = vsub.f32 %v726_v34, %v742_v35  ;;  %v728_v55 = vld [vmem:[%s1644_s26 + $0x50] sm:$0xff]  ;;  %v729_v0 = vld [vmem:[%s1644_s26 + $0x58] sm:$0xff] }
  0x98   : > { %v783_v40 = vadd.f32 %v782_v33, %v768_v27  ;;  %v771_v48 = vmul.f32 %v755_v31, %v755_v31  ;;  %v772_v51 = vmul.f32 %v756_v36, %v756_v36  ;;  %v744_v56 = vld [vmem:[%s1647_s25 + $0x50] sm:$0xff]  ;;  %v759_v61 = vsub.f32 %v727_v45, %v743_v46  ;;  %v745_v1 = vld [vmem:[%s1647_s25 + $0x58] sm:$0xff]  ;;  %v730_v10 = vld [vmem:[%s1644_s26 + $0x60] sm:$0xff]  ;;  %p1279_p3 = pneg %p1278_p1 }
  0x99   : > { %v1687_v42 = vrot.slane %v377_v37, %v1669_v23  ;;  %v1691_v43 = vcombine.high %v1684_v38, %v1684_v38  ;;  %v399_v44 = vsel %vm398_vm0, %v1684_v38, -inf  ;;  %v773_v62 = vmul.f32 %v757_v41, %v757_v41  ;;  %v746_v11 = vld [vmem:[%s1647_s25 + $0x60] sm:$0xff]  ;;  %v731_v27 = vld [vmem:[%s1644_s26 + $0x68] sm:$0xff]  ;;  %v732_v37 = vld [vmem:[%s1644_s26 + $0x70] sm:$0xff] }
  0x9a   : > { %v784_v49 = vadd.f32 %v783_v40, %v769_v32  ;;  %v400_v50 = vrot.slane %v399_v44, 4  ;;  %v760_v7 = vsub.f32 %v728_v55, %v744_v56  ;;  %v774_v8 = vmul.f32 %v758_v47, %v758_v47  ;;  %v747_v29 = vld [vmem:[%s1647_s25 + $0x68] sm:$0xff] }
  0x9b   : > { %v1699_v52 = vcombine.high %v1687_v42, %v1687_v42  ;;  %v406_v53 = vsel %vm398_vm0, %v1691_v43, -inf  ;;  %v413_v54 = vsel %vm398_vm0, %v1687_v42, -inf  ;;  %v761_v17 = vsub.f32 %v729_v0, %v745_v1 }
  0x9c   : > { %v785_v57 = vadd.f32 %v784_v49, %v770_v39  ;;  %v401_v58 = vmax.f32 %v399_v44, %v400_v50  ;;  %v407_v59 = vrot.slane %v406_v53, 4  ;;  %v414_v60 = vrot.slane %v413_v54, 4  ;;  %v748_v39 = vld [vmem:[%s1647_s25 + $0x70] sm:$0xff]  ;;  %v749_v49 = vld [vmem:[%s1647_s25 + $0x78] sm:$0xff] }
  0x9d   : > { %v420_v63 = vsel %vm398_vm0, %v1699_v52, -inf  ;;  %v775_v18 = vmul.f32 %v759_v61, %v759_v61  ;;  %v1387_v20 = vmov 269488144   ;;  %v762_v30 = vsub.f32 %v730_v10, %v746_v11  ;;  %v1738_v11 = vld [vmem:[%s1629_s7] sm:$0xf]  ;;  %s1390_s7 = smov [#allocation11]  }
  0x9e   : > { %v786_v3 = vadd.f32 %v785_v57, %v771_v48  ;;  %v402_v4 = vrot.slane %v401_v58, 2  ;;  %v408_v5 = vmax.f32 %v406_v53, %v407_v59  ;;  %v415_v6 = vmax.f32 %v413_v54, %v414_v60  ;;  %v733_v48 = vld [vmem:[%s1644_s26 + $0x78] sm:$0xff]  ;;  %s1280_s27 = sshll.u32 %s1390_s7, 4  ;;  %s1281_s27 = int_to_ptr.vmem [resolvable:$false] %s1280_s27 }
  0x9f   : > { %v421_v9 = vrot.slane %v420_v63, 4  ;;  %v633_v21 = vunpack.c.l.s4 %v1387_v20  ;;  %v776_v31 = vmul.f32 %v760_v7, %v760_v7  ;;  %v763_v44 = vsub.f32 %v731_v27, %v747_v29  ;;  %s1282_s17 = scalar_lea.vmem %s1281_s27, 128  ;;  %p1283_p9 = scmp.lt.s32.totalorder %s880_s8, %s1281_s27 }
  0xa0   : > { %v787_v12 = vadd.f32 %v786_v3, %v772_v51  ;;  %v403_v14 = vmax.f32 %v401_v58, %v402_v4  ;;  %v409_v15 = vrot.slane %v408_v5, 2  ;;  %v416_v16 = vrot.slane %v415_v6, 2  ;;  %p1284_p0 = scmp.lt.s32.totalorder %s1282_s17, %s1276_s16 }
  0xa1   : > { %v422_v19 = vmax.f32 %v420_v63, %v421_v9  ;;  %v634_v41 = vunpack.c.0.s8 %v633_v21  ;;  %v777_v45 = vmul.f32 %v761_v17, %v761_v17  ;;  %v764_v53 = vsub.f32 %v732_v37, %v748_v39 }
  0xa2   : > { %v788_v22 = vadd.f32 %v787_v12, %v773_v62  ;;  %v404_v24 = vrot.slane %v403_v14, 1  ;;  %v410_v25 = vmax.f32 %v408_v5, %v409_v15  ;;  %v417_v26 = vmax.f32 %v415_v6, %v416_v16  ;;  %p1285_p6 = por %p1284_p0, %p1283_p9 }
  0xa3   : > { %v423_v32 = vrot.slane %v422_v19, 2  ;;  %v778_v54 = vmul.f32 %v762_v30, %v762_v30  ;;  %v765_v58 = vsub.f32 %v733_v48, %v749_v49  ;;  %v779_v59 = vmul.f32 %v763_v44, %v763_v44 }
  0xa4   : > { %v789_v33 = vadd.f32 %v788_v22, %v774_v8  ;;  %v1715_v34 = vmax.f32 %v403_v14, %v404_v24  ;;  %v411_v35 = vrot.slane %v410_v25, 1  ;;  %v418_v36 = vrot.slane %v417_v26, 1  ;;  %p1286_p11 = pnand %p1285_p6, %p1279_p3 }
  0xa5   : > { %v424_v40 = vmax.f32 %v422_v19, %v423_v32  ;;  %v637_v61 = vsub.s32 %v634_v41, %v1662_v13  ;;  %v780_v0 = vmul.f32 %v764_v53, %v764_v53  ;;  %v781_v4 = vmul.f32 %v765_v58, %v765_v58 }
  0xa6   : > { %v790_v46 = vadd.f32 %v789_v33, %v775_v18  ;;  %v1719_v47 = vmax.f32 %v410_v25, %v411_v35  ;;  %v1723_v50 = vmax.f32 %v417_v26, %v418_v36  ;;  %v516_v9 = vsub.s32 0, %v1662_v13 }
  0xa7   : > { %v425_v51 = vrot.slane %v424_v40, 1  ;;  %v638_v6 = vrot.slane %v1662_v13, %v637_v61  ;;  %v520_v10 = vsub.s32 1, %v1662_v13  ;;  %v524_v15 = vsub.s32 2, %v1662_v13 }
  0xa8   : > { %v791_v55 = vadd.f32 %v790_v46, %v776_v31  ;;  %v431_v56 = vcombine.low %v1715_v34, %v1719_v47  ;;  %v528_v18 = vsub.s32 3, %v1662_v13  ;;  %v1748_v21 = vrot.slane %v1738_v11, %v516_v9 }
  0xa9   : > { %v1727_v57 = vmax.f32 %v424_v40, %v425_v51  ;;  %v1760_v26 = vrot.slane %v1738_v11, %v524_v15 }
  0xaa   : > { %v792_v60 = vadd.f32 %v791_v55, %v777_v45  ;;  %v439_v63 = vrot.slane %v431_v56, %v1669_v23  ;;  %v1765_v29 = vrot.slane %v1738_v11, %v528_v18  ;;  %vm530_vm3 = vcmp.eq.s32.totalorder %v1662_v13, %v1748_v21 }
  0xab   : > { %v432_v62 = vcombine.low %v1723_v50, %v1727_v57  ;;  %vm532_vm7 = vcmp.eq.s32.totalorder %v1662_v13, %v1760_v26  ;;  %v534_v48 = vsel %vm530_vm3, %v1684_v38, 0.0 }
  0xac   : > { %v793_v1 = vadd.f32 %v792_v60, %v778_v54  ;;  %vm533_vm8 = vcmp.eq.s32.totalorder %v1662_v13, %v1765_v29  ;;  %v536_v56 = vsel %vm532_vm7, %v1687_v42, 0.0  ;;  %v538_v61 = vsel %vm398_vm0, %v534_v48, 0.0 }
  0xad   : > { %v446_v3 = vrot.slane %v432_v62, %v1669_v23  ;;  %v537_v38 = vsel %vm533_vm8, %v1699_v52, 0.0  ;;  %vm832_vm8 = vcmp.lt.s32.totalorder %v374_v2, 512 }
  0xae   : > { %v794_v5 = vadd.f32 %v793_v1, %v779_v59 }
  0xaf   : > { %v447_v7 = vcombine.low %v439_v63, %v446_v3 }
  0xb0   : > { %v795_v8 = vadd.f32 %v794_v5, %v780_v0 }
  0xb1   : > { %v449_v12 = vsub.f32 %v1674_v28, %v447_v7  ;;  %vm631_vm1 = vcmp.eq.f32.partialorder %v1674_v28, %v447_v7  ;;  %v1753_v28 = vrot.slane %v1738_v11, %v520_v10 }
  0xb2   : > { %v796_v14 = vadd.f32 %v795_v8, %v781_v4  ;;  %v639_v16 = vsel %vm631_vm1, %v638_v6, 2  ;;  %v1388_v6 = vmov 0.0  }
  0xb3   : > { %v450_v17 = vmul.f32 1.442695, %v449_v12  ;;  %v640_v19 = vcombine.high %v639_v16, %v639_v16  ;;  %v647_v20 = vrot.slane %v639_v16, %v1669_v23  ;;  %vm531_vm4 = vcmp.eq.s32.totalorder %v1662_v13, %v1753_v28 }
  0xb4   : > { %797 = vadd.xlane.f32.xlu0 %v796_v14  ;;  %v535_v49 = vsel %vm531_vm4, %v1691_v43, 0.0 }
  0xb5   : > { %1154 = vpow2.f32 %v450_v17  ;;  %v654_v22 = vrot.slane %v640_v19, %v1669_v23  ;;  %v655_v24 = vcombine.high %v647_v20, %v647_v20  ;;  %v657_v25 = vsel %vm398_vm0, %v647_v20, 2147483647 }
  0xb6   : > { %v658_v27 = vrot.slane %v657_v25, 4  ;;  %v1796_v62 = vsel %vm398_vm0, %v535_v49, 0.0 }
  0xb7   : > { %v656_v30 = vcombine.high %v654_v22, %v654_v22  ;;  %v667_v31 = vsel %vm398_vm0, %v655_v24, 2147483647  ;;  %v677_v32 = vsel %vm398_vm0, %v654_v22, 2147483647 }
  0xb8   : > { %vm659_vm2 = vcmp.lt.s32.totalorder %v657_v25, %v658_v27  ;;  %v668_v33 = vrot.slane %v667_v31, 4  ;;  %v678_v35 = vrot.slane %v677_v32, 4 }
  0xb9   : > { %v660_v36 = vsel %vm659_vm2, %v657_v25, %v658_v27  ;;  %v687_v37 = vsel %vm398_vm0, %v656_v30, 2147483647 }
  0xba   : > { %v661_v39 = vrot.slane %v660_v36, 2  ;;  %vm669_vm5 = vcmp.lt.s32.totalorder %v667_v31, %v668_v33  ;;  %vm679_vm6 = vcmp.lt.s32.totalorder %v677_v32, %v678_v35  ;;  %v688_v40 = vrot.slane %v687_v37, 4 }
  0xbb   : > { %v670_v41 = vsel %vm669_vm5, %v667_v31, %v668_v33  ;;  %v680_v44 = vsel %vm679_vm6, %v677_v32, %v678_v35  ;;  %v539_v31 = vrot.slane %v538_v61, 4 }
  0xbc   : > { %vm662_vm9 = vcmp.lt.s32.totalorder %v660_v36, %v661_v39  ;;  %v671_v45 = vrot.slane %v670_v41, 2  ;;  %v681_v46 = vrot.slane %v680_v44, 2  ;;  %vm689_vm10 = vcmp.lt.s32.totalorder %v687_v37, %v688_v40 }
  0xbd   : > { %v663_v51 = vsel %vm662_vm9, %v660_v36, %v661_v39  ;;  %v690_v53 = vsel %vm689_vm10, %v687_v37, %v688_v40  ;;  %v552_v39 = vsel %vm398_vm0, %v536_v56, 0.0  ;;  %v559_v40 = vsel %vm398_vm0, %v537_v38, 0.0 }
  0xbe   : > { %v664_v54 = vrot.slane %v663_v51, 1  ;;  %vm672_vm11 = vcmp.lt.s32.totalorder %v670_v41, %v671_v45  ;;  %vm682_vm12 = vcmp.lt.s32.totalorder %v680_v44, %v681_v46  ;;  %v691_v55 = vrot.slane %v690_v53, 2 }
  0xbf   : > { %v673_v58 = vsel %vm672_vm11, %v670_v41, %v671_v45  ;;  %v683_v59 = vsel %vm682_vm12, %v680_v44, %v681_v46 }
  0xc0   : > { %vm665_vm14 = vcmp.lt.s32.totalorder %v663_v51, %v664_v54  ;;  %v674_v43 = vrot.slane %v673_v58, 1  ;;  %v684_v60 = vrot.slane %v683_v59, 1  ;;  %vm692_vm15 = vcmp.lt.s32.totalorder %v690_v53, %v691_v55 }
  0xc1   : > { %v1798_v63 = vsel %vm665_vm14, %v663_v51, %v664_v54  ;;  %v693_v42 = vsel %vm692_vm15, %v690_v53, %v691_v55  ;;  %v546_v51 = vrot.slane %v1796_v62, 4 }
  0xc2   : > { %v1155_v0 = vpop.eup %1154  ;;  %vm675_vm1 = vcmp.lt.s32.totalorder %v673_v58, %v674_v43  ;;  %vm685_vm2 = vcmp.lt.s32.totalorder %v683_v59, %v684_v60  ;;  %v694_v1 = vrot.slane %v693_v42, 1  ;;  %vm697_vm3 = vcmp.eq.s32.totalorder %v1798_v63, %v1748_v21 }
  0xc3   : > { %v453_v52 = vcombine.high %v1155_v0, %v1155_v0  ;;  %v460_v3 = vrot.slane %v1155_v0, %v1669_v23  ;;  %v1803_v4 = vsel %vm675_vm1, %v673_v58, %v674_v43  ;;  %v1805_v5 = vsel %vm685_vm2, %v683_v59, %v684_v60 }
  0xc4   : > { %vm695_vm4 = vcmp.lt.s32.totalorder %v693_v42, %v694_v1  ;;  %vm698_vm5 = vcmp.eq.s32.totalorder %v1803_v4, %v1753_v28  ;;  %vm699_vm6 = vcmp.eq.s32.totalorder %v1805_v5, %v1760_v26  ;;  %v1064_v7 = vsel %vm697_vm3, 1.0, %v1388_v6 }
  0xc5   : > { %v467_v8 = vrot.slane %v453_v52, %v1669_v23  ;;  %v468_v12 = vcombine.high %v460_v3, %v460_v3  ;;  %v474_v14 = vsel %vm398_vm0, %v460_v3, 0.0  ;;  %v1813_v16 = vsel %vm695_vm4, %v693_v42, %v694_v1 }
  0xc6   : > { %v475_v17 = vrot.slane %v474_v14, 4  ;;  %vm700_vm7 = vcmp.eq.s32.totalorder %v1813_v16, %v1765_v29  ;;  %v1065_v19 = vsel %vm698_vm5, 1.0, %v1388_v6  ;;  %v1066_v20 = vsel %vm699_vm6, 1.0, %v1388_v6 }
  0xc7   : > { %v469_v21 = vcombine.high %v467_v8, %v467_v8  ;;  %v481_v28 = vsel %vm398_vm0, %v468_v12, 0.0  ;;  %v488_v22 = vsel %vm398_vm0, %v467_v8, 0.0  ;;  %v1067_v24 = vsel %vm700_vm7, 1.0, %v1388_v6 }
  0xc8   : > { %v476_v25 = vadd.f32 %v475_v17, %v474_v14  ;;  %v482_v26 = vrot.slane %v481_v28, 4  ;;  %v489_v23 = vrot.slane %v488_v22, 4  ;;  %v709_v27 = vsel %vm621_vm13, %v1064_v7, 0.0 }
  0xc9   : > { %v495_v30 = vsel %vm398_vm0, %v469_v21, 0.0  ;;  %v710_v32 = vsel %vm621_vm13, %v1065_v19, 0.0  ;;  %v712_v29 = vsel %vm621_vm13, %v1066_v20, 0.0  ;;  %v714_v44 = vsel %vm621_vm13, %v1067_v24, 0.0 }
  0xca   : > { %v477_v33 = vrot.slane %v476_v25, 2  ;;  %v483_v35 = vadd.f32 %v482_v26, %v481_v28  ;;  %v490_v36 = vadd.f32 %v489_v23, %v488_v22  ;;  %v496_v37 = vrot.slane %v495_v30, 4 }
  0xcb   : > { %v711_v41 = vadd.f32 %v710_v32, %v709_v27  ;;  %v540_v43 = vadd.f32 %v539_v31, %v538_v61  ;;  %v553_v60 = vrot.slane %v552_v39, 4  ;;  %v560_v42 = vrot.slane %v559_v40, 4 }
  0xcc   : > { %v478_v45 = vadd.f32 %v477_v33, %v476_v25  ;;  %v484_v46 = vrot.slane %v483_v35, 2  ;;  %v491_v48 = vrot.slane %v490_v36, 2  ;;  %v497_v49 = vadd.f32 %v496_v37, %v495_v30 }
  0xcd   : > { %v713_v53 = vadd.f32 %v712_v29, %v711_v41  ;;  %v547_v3 = vadd.f32 %v546_v51, %v1796_v62  ;;  %v554_v12 = vadd.f32 %v553_v60, %v552_v39  ;;  %v541_v17 = vrot.slane %v540_v43, 2 }
  0xce   : > { %v479_v54 = vrot.slane %v478_v45, 1  ;;  %v485_v55 = vadd.f32 %v484_v46, %v483_v35  ;;  %v492_v58 = vadd.f32 %v491_v48, %v490_v36  ;;  %v498_v59 = vrot.slane %v497_v49, 2 }
  0xcf   : > { %v715_v56 = vadd.f32 %v714_v44, %v713_v53  ;;  %v561_v19 = vadd.f32 %v560_v42, %v559_v40  ;;  %v548_v61 = vrot.slane %v547_v3, 2  ;;  %v555_v20 = vrot.slane %v554_v12, 2 }
  0xd0   : > { %v480_v0 = vadd.f32 %v479_v54, %v478_v45  ;;  %v486_v38 = vrot.slane %v485_v55, 1  ;;  %v493_v1 = vrot.slane %v492_v58, 1  ;;  %v499_v52 = vadd.f32 %v498_v59, %v497_v49 }
  0xd1   : > { %716 = vadd.xlane.f32.xlu1 %v715_v56  ;;  %v542_v21 = vadd.f32 %v541_v17, %v540_v43  ;;  %v562_v28 = vrot.slane %v561_v19, 2  ;;  %v549_v22 = vadd.f32 %v548_v61, %v547_v3  ;;  %v556_v24 = vadd.f32 %v555_v20, %v554_v12 }
  0xd2   : > { %v487_v6 = vadd.f32 %v486_v38, %v485_v55  ;;  %v494_v7 = vadd.f32 %v493_v1, %v492_v58  ;;  %v500_v8 = vrot.slane %v499_v52, 1  ;;  %1156 = vlog2.f32 %v480_v0 }
  0xd3   : > { %v543_v25 = vrot.slane %v542_v21, 1  ;;  %v563_v62 = vadd.f32 %v562_v28, %v561_v19  ;;  %v550_v26 = vrot.slane %v549_v22, 1  ;;  %v1389_v23 = vmov 1966171168  }
  0xd4   : > { %v501_v14 = vadd.f32 %v500_v8, %v499_v52  ;;  %1158 = vlog2.f32 %v487_v6  ;;  %v577_v27 = vunpack.c.l.s4 %v1389_v23  ;;  %v557_v31 = vrot.slane %v556_v24, 1 }
  0xd5   : > { %1160 = vlog2.f32 %v494_v7  ;;  %v544_v29 = vadd.f32 %v543_v25, %v542_v21  ;;  %v564_v33 = vrot.slane %v563_v62, 1  ;;  %v551_v40 = vadd.f32 %v550_v26, %v549_v22 }
  0xd6   : > { %1162 = vlog2.f32 %v501_v14  ;;  %v578_v41 = vunpack.c.0.s8 %v577_v27  ;;  %v558_v46 = vadd.f32 %v557_v31, %v556_v24  ;;  %vm373_vm0 = vcmp.ge.s32.totalorder %v1738_v11, 0 }
  0xd7   : > { %v565_v51 = vadd.f32 %v564_v33, %v563_v62 }
  0xd8   : > { %v581_v59 = vsub.s32 %v578_v41, %v1662_v13  ;;  %v807_v13 = vcombine.low %v1805_v5, %v1813_v16 }
  0xda   : > { %v821_v14 = vrot.slane %v807_v13, %v581_v59 }
  0xdf   : > { %v1157_v30 = vpop.eup %1156 }
  0xe0   : > { %v503_v32 = vmul.f32 0.6931472, %v1157_v30 }
  0xe1   : > { %v1159_v35 = vpop.eup %1158 }
  0xe2   : > { %v1161_v36 = vpop.eup %1160  ;;  %v505_v37 = vmul.f32 0.6931472, %v1159_v35  ;;  %v510_v39 = vadd.f32 %v503_v32, %v1715_v34 }
  0xe3   : > { %v1163_v44 = vpop.eup %1162  ;;  %v507_v45 = vmul.f32 0.6931472, %v1161_v36 }
  0xe4   : > { %v509_v48 = vmul.f32 0.6931472, %v1163_v44  ;;  %v511_v49 = vadd.f32 %v505_v37, %v1719_v47  ;;  %v566_v53 = vsub.f32 %v510_v39, %v544_v29 }
  0xe5   : > { %v512_v54 = vadd.f32 %v507_v45, %v1723_v50 }
  0xe6   : > { %v513_v55 = vadd.f32 %v509_v48, %v1727_v57  ;;  %v567_v58 = vsub.f32 %v511_v49, %v551_v40 }
  0xe7   : > { %v568_v43 = vsub.f32 %v512_v54, %v558_v46 }
  0xe8   : > { %v569_v60 = vsub.f32 %v513_v55, %v565_v51  ;;  %v574_v34 = vcombine.low %v566_v53, %v567_v58 }
  0xea   : > { %v575_v42 = vcombine.low %v568_v43, %v569_v60  ;;  %v582_v56 = vrot.slane %v574_v34, %v581_v59 }
  0xec   : > { %v589_v0 = vrot.slane %v575_v42, %v581_v59 }
  0xee   : > { %v590_v38 = vcombine.low %v582_v56, %v589_v0 }
  0xf0   : > { %v597_v1 = vrot.slane %v590_v38, %v581_v59 }
  0xf2   : > { %v599_v47 = vsel %vm373_vm0, %v597_v1, 0.0 }
  0xf3   : > { %v604_v52 = vrot.slane %v599_v47, %v516_v9  ;;  %v608_v50 = vrot.slane %v599_v47, %v520_v10  ;;  %v612_v57 = vrot.slane %v599_v47, %v524_v15  ;;  %v616_v3 = vrot.slane %v599_v47, %v528_v18 }
  0xf4   : > { %v806_v15 = vcombine.low %v1798_v63, %v1803_v4 }
  0xf5   : > { %v622_v6 = vsel %vm621_vm13, %v604_v52, 0.0  ;;  %v623_v7 = vsel %vm621_vm13, %v608_v50, 0.0  ;;  %v625_v11 = vsel %vm621_vm13, %v612_v57, 0.0  ;;  %v627_v9 = vsel %vm621_vm13, %v616_v3, 0.0 }
  0xf6   : > { %v624_v8 = vadd.f32 %v623_v7, %v622_v6  ;;  %v814_v18 = vrot.slane %v806_v15, %v581_v59 }
  0xf8   : > { %v626_v12 = vadd.f32 %v625_v11, %v624_v8  ;;  %v822_v17 = vcombine.low %v814_v18, %v821_v14 }
  0xfa   : > { %v628_v10 = vadd.f32 %v627_v9, %v626_v12  ;;  %v829_v19 = vrot.slane %v822_v17, %v581_v59 }
  0xfc   : > { %629 = vadd.xlane.f32.xlu0 %v628_v10  ;;  %834 = vst.msk [vmem:[%s365_s28] sm:$0xf] %vm832_vm8, %v829_v19 }
  0xfd   : > { %1289 = shalt.err (!%p1286_p11)
}
  0xfe   : > { %s1290_s13 = scalar_lea.hbm %s877_s11, 64  ;;  %s1294_s12 = scalar_lea.hbm %s1912_s5, 128 }
  0xff   : > { %p1291_p4 = scmp.ne.s32.totalorder %s877_s11, %s1290_s13  ;;  %p1295_p7 = scmp.lt.s32.totalorder %s877_s11, %s1912_s5 }
 0x100   : > { %p1296_p2 = scmp.lt.s32.totalorder %s1294_s12, %s1290_s13 }
 0x101   : > { %p1292_p12 = pnand %p1291_p4, %p1931_p10 }
 0x102   : > { %p1297_p8 = por %p1296_p2, %p1295_p7 }
 0x103   : > { %p1293_p5 = pneg %p1292_p12 }
 0x105   : > { %p1298_p13 = pnand %p1297_p8, %p1293_p5 }
 0x107   : > { %1301 = shalt.err (!%p1298_p13)
}
 0x108   : > { %1090 = dma.vmem_to_hbm [thread:$0]  (%p1931_p10), %s880_s8, 64, %s877_s11, %s852_s20   ;;  %v836_v28 = vand.u32 127, %v374_v2 }
 0x109   : > { %s1069_s28 = sshll.u32 %s1443_s22, 4  ;;  %s358_s1 = scalar_lea.vmem [#allocation10], %s1623_s23 }
 0x10a   : > { %vm839_vm9 = vcmp.eq.s32.totalorder %v836_v28, 1  ;;  %vm837_vm10 = vcmp.eq.s32.totalorder %v836_v28, 0  ;;  %vm843_vm11 = vcmp.eq.s32.totalorder %v836_v28, 2  ;;  %s865_s8 = sshll.u32 %s358_s1, 4  ;;  %s863_s11 = scalar_lea.hbm %s1911_s4, %s1069_s28  ;;  %s866_s8 = int_to_ptr.vmem [resolvable:$true] %s865_s8 }
 0x10b   : > { %s848_s20 = scalar_lea.sflag [#allocation4], %s1623_s23  ;;  %s1302_s16 = scalar_lea.vmem %s866_s8, 16 }
 0x10c   : > { %p1303_p1 = scmp.ne.s32.totalorder %s866_s8, %s1302_s16  ;;  %s1391_s7 = smov [#allocation10]  }
 0x10d   : > { %s1306_s27 = sshll.u32 %s1391_s7, 4  ;;  %s1307_s27 = int_to_ptr.vmem [resolvable:$false] %s1306_s27 }
 0x10e   : > { %p1304_p3 = pnand %p1303_p1, %p1931_p10  ;;  %s1308_s22 = scalar_lea.vmem %s1307_s27, 32 }
 0x10f   : > { %p1309_p0 = scmp.lt.s32.totalorder %s866_s8, %s1307_s27  ;;  %p1310_p6 = scmp.lt.s32.totalorder %s1308_s22, %s1302_s16 }
 0x110   : > { %p1305_p9 = pneg %p1304_p3 }
 0x111   : > { %p1311_p11 = por %p1310_p6, %p1309_p0 }
 0x113   : > { %p1312_p4 = pnand %p1311_p11, %p1305_p9 }
 0x13d   : > { %v798_v63 = vpop.xlane.xlu0 %797 }
 0x13e   : > { %v799_v4 = vrot.slane %v798_v63, 4 }
 0x140   : > { %v800_v5 = vadd.f32 %v799_v4, %v798_v63 }
 0x142   : > { %v801_v16 = vrot.slane %v800_v5, 2 }
 0x144   : > { %v802_v61 = vadd.f32 %v801_v16, %v800_v5 }
 0x146   : > { %v803_v20 = vrot.slane %v802_v61, 1 }
 0x148   : > { %v804_v21 = vadd.f32 %v803_v20, %v802_v61 }
 0x14a   : > { %1079 = vpush %v804_v21 }
 0x15a   : > { %v717_v24 = vpop.xlane.xlu1 %716 }
 0x15b   : > { %v844_v23 = vsel %vm843_vm11, %v717_v24, 0.0 }
 0x17b   : > { %s1080_s25 = spop %1079 }
 0x17c   : > { %v840_v22 = vstv %s1080_s25 }
 0x17d   : > { %v841_v62 = vsel %vm839_vm9, %v840_v22, 0.0 }
 0x185   : > { %v630_v25 = vpop.xlane.xlu0 %629 }
 0x186   : > { %v838_v26 = vsel %vm837_vm10, %v630_v25, 0.0 }
 0x187   : > { %v842_v27 = vadd.f32 %v841_v62, %v838_v26 }
 0x189   : > { %v845_v30 = vadd.f32 %v844_v23, %v842_v27 }
 0x18b   : > { %846 = vst [vmem:[%s358_s1] sm:$0x1] %v845_v30 }
 0x18c   : > { %1315 = shalt.err (!%p1312_p4)
}
 0x18d   : > { %s1316_s17 = scalar_lea.hbm %s863_s11, 16  ;;  %s1320_s10 = scalar_lea.hbm %s1911_s4, 32 }
 0x18e   : > { %p1317_p12 = scmp.ne.s32.totalorder %s863_s11, %s1316_s17  ;;  %p1321_p2 = scmp.lt.s32.totalorder %s863_s11, %s1911_s4 }
 0x18f   : > { %p1322_p8 = scmp.lt.s32.totalorder %s1320_s10, %s1316_s17 }
 0x190   : > { %p1318_p5 = pnand %p1317_p12, %p1931_p10 }
 0x191   : > { %p1323_p13 = por %p1322_p8, %p1321_p2 }
 0x192   : > { %p1319_p7 = pneg %p1318_p5 }
 0x194   : > { %p1324_p1 = pnand %p1323_p13, %p1319_p7 }
 0x196   : > { %1327 = shalt.err (!%p1324_p1)
}
 0x197   : > { %1089 = dma.vmem_to_hbm [thread:$0]  (%p1931_p10), %s866_s8, 16, %s863_s11, %s848_s20  }
 0x198 PF: > { %s891_s26 = sand.u32 1, %s1366_s18   ;;  %p1932_p3 = scmp.ne.s32.totalorder %s1921_s30, 0 }
 0x199   : > { %p1933_p9 = scmp.ge.s32.totalorder %s1378_s21, 2  ;;  %s892_s14 = scalar_lea.sflag [#allocation4], %s891_s26 }
 0x19b   : > { %p1107_p0 = pnand %p1933_p9, %p1932_p3 }
 0x19d   : > { %p1108_p6 = pneg %p1107_p0 }
 0x19f   : > { %1357 = dma.done.wait (%p1108_p6), %s892_s14, 16  }
 0x1a0   : > { %1359 = vsyncadd (%p1108_p6), %s892_s14, 4294967280  ;;  %s900_s25 = scalar_lea.sflag [#allocation12], %s891_s26 }
 0x1a1   : > { %1361 = dma.done.wait (%p1108_p6), %s900_s25, 64  }
 0x1a2   : > { %1363 = vsyncadd (%p1108_p6), %s900_s25, 4294967232  ;;  %s1934_s28 = sld [smem:[#allocation18_spill]]  ;;  %p28_p10 = scmp.ge.s32.totalorder %s1447_s24, 4  }
 0x1a3   : > { %s1935_s20 = sld [smem:[#allocation19_spill]]  ;;  %s1936_s18 = smov %s1370_s19 }
 0x1a4   : > { %s1938_s21 = smov %s1447_s24  ;;  %30 = sbr.rel (!%p28_p10) target bundleno = 13 (0xd), region = 135 }
 0x1a8   : > { %s1937_s19 = smov %s1934_s28 }
 0x1a9   :  { %905 = vsyncpa [#allocation3], 1 }
 0x1aa   :  { %907 = vsyncpa [#allocation3 + $0x1], 1 }
 0x1ab   :  { %908 = vsyncpa [#allocation6], 1 }
 0x1ac   :  { %910 = vsyncpa [#allocation6 + $0x1], 1 }
 0x1ad   :  { %911 = vsyncpa [#allocation9], 1 }
 0x1ae   :  { %913 = vsyncpa [#allocation9 + $0x1], 1 }
 0x1af   :  { %914 = vsyncpa [#allocation4], 1 }
 0x1b0   :  { %916 = vsyncpa [#allocation4 + $0x1], 1 }
 0x1b1   :  { %917 = vsyncpa [#allocation12], 1 }
 0x1b2   :  { %919 = vsyncpa [#allocation12 + $0x1], 1 }

</bundles_post_ra>
